<compile_context>
chip_gen: v6e
topology: v6e:2x2x1
jax: 0.10.0
libtpu: 0.0.40
codegen_flags: <defaults>
</compile_context>

<pallas_src>
import functools

import jax
import jax.numpy as jnp
from jax.experimental import pallas as pl
from jax.experimental.pallas import tpu as pltpu


def _round_up(x, m):
    return (x + m - 1) // m * m


def _linear_kernel(x_ref, w_ref, b_ref, o_ref):
    # x_ref: (TM, K_pad), w_ref: (K_pad, N_pad), b_ref: (1, N_pad), o_ref: (TM, N_pad)
    acc = jnp.dot(x_ref[...], w_ref[...], preferred_element_type=jnp.float32)
    o_ref[...] = (acc + b_ref[...].astype(jnp.float32)).astype(o_ref.dtype)


def _choose_tm(m, k_pad, n_pad, bytes_per_elem, budget_bytes=12 * 1024 * 1024):
    """Tile rows: multiple of 8, target 512, shrink to fit the VMEM budget."""
    tm = min(512, _round_up(m, 8))
    tm = max(8, _round_up(tm, 8))

    def footprint(t):
        # double-buffered x tile + out tile, plus resident weight and bias.
        return (2 * (t * k_pad + t * n_pad) * bytes_per_elem
                + k_pad * n_pad * bytes_per_elem
                + n_pad * bytes_per_elem)

    while tm > 8 and footprint(tm) > budget_bytes:
        tm = max(8, _round_up(tm // 2, 8))
    return tm
    # TODO(synk): for very large C_in (>~4K) add a K grid axis with an f32
    # accumulator scratch (pattern P3) instead of shrinking TM.


def prepack_weight(weight, bias, compute_dtype=jnp.float32):
    """One-time packing: transpose to [C_in, N], zero-pad K and N to 128."""
    num_class, c_in = weight.shape
    k_pad = _round_up(c_in, 128)
    n_pad = _round_up(num_class, 128)

    w = jnp.zeros((k_pad, n_pad), dtype=compute_dtype)
    w = w.at[:c_in, :num_class].set(weight.T.astype(compute_dtype))
    b = jnp.zeros((1, n_pad), dtype=jnp.float32)
    b = b.at[0, :num_class].set(bias.astype(jnp.float32))
    return w, b


@functools.partial(jax.jit, static_argnames=("num_class", "compute_dtype"))
def ctc_forward_packed(x, w_packed, b_packed, *, num_class,
                       compute_dtype=jnp.float32):
    """y = Linear(x) with a prepacked weight ([K_pad, N_pad]) and bias."""
    B, T, c_in = x.shape
    k_pad, n_pad = w_packed.shape
    M = B * T

    bytes_per_elem = jnp.dtype(compute_dtype).itemsize
    tm = _choose_tm(M, k_pad, n_pad, bytes_per_elem)
    m_pad = _round_up(M, tm)

    # Pad x once (rows to a tile multiple, features to the lane-dense K_pad).
    x2d = x.reshape(M, c_in).astype(compute_dtype)
    x2d = jnp.pad(x2d, ((0, m_pad - M), (0, k_pad - c_in)))

    grid = (m_pad // tm,)
    out2d = pl.pallas_call(
        _linear_kernel,
        out_shape=jax.ShapeDtypeStruct((m_pad, n_pad), x.dtype),
        grid=grid,
        in_specs=[
            pl.BlockSpec((tm, k_pad), lambda i: (i, 0)),      # x tile, pipelined
            pl.BlockSpec((k_pad, n_pad), lambda i: (0, 0)),   # weight, VMEM-resident
            pl.BlockSpec((1, n_pad), lambda i: (0, 0)),       # bias, VMEM-resident
        ],
        out_specs=pl.BlockSpec((tm, n_pad), lambda i: (i, 0)),
        compiler_params=pltpu.CompilerParams(
            dimension_semantics=("parallel",)),               # megacore on v7x
    )(x2d, w_packed, b_packed)

    return out2d[:M, :num_class].reshape(B, T, num_class)


def ctc_forward(x, weight, bias, compute_dtype=jnp.float32):
    """Equivalent of CTC.forward: y = x @ weight.T + bias (PyTorch Linear).

    Args:
      x:      [B, T, C_in]
      weight: [num_class, C_in]  (PyTorch layout)
      bias:   [num_class]
    Returns:
      [B, T, num_class]
    """
    num_class = weight.shape[0]
    w_packed, b_packed = prepack_weight(weight, bias, compute_dtype)
    return ctc_forward_packed(x, w_packed, b_packed, num_class=num_class,
                              compute_dtype=compute_dtype)


if __name__ == "__main__":
    # Small deterministic example: batch=2, seq=8, input_channels=32, num_class=16
    B, T, C_IN, NUM_CLASS = 2, 8, 32, 16

    key = jax.random.PRNGKey(0)
    kx, kw, kb = jax.random.split(key, 3)

    x = jax.random.normal(kx, (B, T, C_IN), dtype=jnp.float32)
    # Deterministic parameter init (PyTorch Linear shapes: [out, in], [out]).
    weight = jax.random.normal(kw, (NUM_CLASS, C_IN), dtype=jnp.float32) * 0.1
    bias = jax.random.normal(kb, (NUM_CLASS,), dtype=jnp.float32) * 0.1

    out = ctc_forward(x, weight, bias)
    out = jax.block_until_ready(out)

    # Reference check against plain JAX.
    ref = x @ weight.T + bias
    assert out.shape == (B, T, NUM_CLASS)
    assert jnp.allclose(out, ref, atol=1e-5, rtol=1e-5)

    print("KERNEL_OK")
</pallas_src>

<mosaic_0001>
module attributes {stable_mosaic.version = 11 : i64} {
  func.func @_linear_kernel(%arg0: i32, %arg1: memref<16x128xf32, #tpu.memory_space<vmem>>, %arg2: memref<128x128xf32, #tpu.memory_space<vmem>>, %arg3: memref<1x128xf32, #tpu.memory_space<vmem>>, %arg4: memref<16x128xf32, #tpu.memory_space<vmem>>) attributes {dimension_semantics = [#tpu.dimension_semantics<parallel>], iteration_bounds = array<i64: 1>, scalar_prefetch = 0 : i64, scratch_operands = 0 : i64, tpu.core_type = #tpu.core_type<tc>, window_params = [{transform_indices = @transform_0, window_bounds = array<i64: 16, 128>}, {pipeline_mode = #tpu.pipeline_mode<synchronous>, transform_indices = @transform_1, window_bounds = array<i64: 128, 128>}, {pipeline_mode = #tpu.pipeline_mode<synchronous>, transform_indices = @transform_2, window_bounds = array<i64: 1, 128>}, {transform_indices = @transform_3, window_bounds = array<i64: 16, 128>}]} {
    %c0 = arith.constant 0 : index
    %c0_0 = arith.constant 0 : index
    %0 = vector.load %arg1[%c0, %c0_0] : memref<16x128xf32, #tpu.memory_space<vmem>>, vector<16x128xf32>
    %c0_1 = arith.constant 0 : index
    %c0_2 = arith.constant 0 : index
    %1 = vector.load %arg2[%c0_1, %c0_2] : memref<128x128xf32, #tpu.memory_space<vmem>>, vector<128x128xf32>
    %cst = arith.constant dense<0.000000e+00> : vector<16x128xf32>
    %2 = tpu.matmul %0, %1, %cst {dimension_numbers = #tpu.dot_dimension_numbers<[1], [0], [0], [1], [0, 0, 1, 1], [], []>} : vector<16x128xf32>, vector<128x128xf32>, vector<16x128xf32> -> vector<16x128xf32>
    %c0_3 = arith.constant 0 : index
    %c0_4 = arith.constant 0 : index
    %3 = vector.load %arg3[%c0_3, %c0_4] : memref<1x128xf32, #tpu.memory_space<vmem>>, vector<1x128xf32>
    %4 = vector.broadcast %3 : vector<1x128xf32> to vector<16x128xf32>
    %5 = arith.addf %2, %4 : vector<16x128xf32>
    %c0_5 = arith.constant 0 : index
    %c0_6 = arith.constant 0 : index
    %6 = vector.load %arg4[%c0_5, %c0_6] : memref<16x128xf32, #tpu.memory_space<vmem>>, vector<16x128xf32>
    tpu.vector_store %arg4[%c0_5, %c0_6], %5 {strides = array<i32>} : memref<16x128xf32, #tpu.memory_space<vmem>>, vector<16x128xf32>,
    return
  }
  func.func @transform_0(%arg0: i32) -> (i32, i32) {
    %c0_i32 = arith.constant 0 : i32
    %c0_i32_0 = arith.constant 0 : i32
    return %arg0, %c0_i32 : i32, i32
  }
  func.func @transform_1(%arg0: i32) -> (i32, i32) {
    %c0_i32 = arith.constant 0 : i32
    %c0_i32_0 = arith.constant 0 : i32
    %c0_i32_1 = arith.constant 0 : i32
    return %c0_i32, %c0_i32_0 : i32, i32
  }
  func.func @transform_2(%arg0: i32) -> (i32, i32) {
    %c0_i32 = arith.constant 0 : i32
    %c0_i32_0 = arith.constant 0 : i32
    %c0_i32_1 = arith.constant 0 : i32
    return %c0_i32, %c0_i32_0 : i32, i32
  }
  func.func @transform_3(%arg0: i32) -> (i32, i32) {
    %c0_i32 = arith.constant 0 : i32
    %c0_i32_0 = arith.constant 0 : i32
    return %arg0, %c0_i32 : i32, i32
  }
}

</mosaic_0001>

<bundles_post_ra>
// kernel: ctc_forward_packed.1
= control target key start
LH: loop header
LB: loop body
LE: loop exit
PB: predicated region body
PF: predicated region fallthrough
CT: control target
= control target key end

     0   :  { %8 = vsyncpa [#allocation3], 0  ;;  %s214_s12 = smov [#allocation2]   ;;  %s255_s0 = inlined_call_operand.vmem [shape: f32[16,128], index: 0, kind: input, shape index: {}]   ;;  %s256_s1 = inlined_call_operand.hbm [shape: f32[128,128], index: 1, kind: input, shape index: {}]   ;;  %s257_s2 = inlined_call_operand.vmem [shape: f32[1,128], index: 2, kind: input, shape index: {}]   ;;  %s258_s3 = inlined_call_operand.vmem [shape: f32[16,128], index: 3, kind: output, shape index: {}]  }
   0x1   :  { %s16_s13 = sshll.u32 %s214_s12, 4  ;;  %s17_s13 = int_to_ptr.vmem [resolvable:$true] %s16_s13 }
   0x2   :  { %s200_s14 = scalar_lea.vmem %s17_s13, 2048  ;;  %p205_p1 = scmp.lt.s32.totalorder %s17_s13, %s17_s13 }
   0x3   :  { %p201_p0 = scmp.ne.s32.totalorder %s17_s13, %s200_s14  ;;  %p206_p2 = scmp.lt.s32.totalorder %s200_s14, %s200_s14 }
   0x5   :  { %p207_p3 = por %p206_p2, %p205_p1 }
   0x7   :  { %p208_p4 = pnand %p207_p3, %p201_p0 }
   0x9   :  { %211 = shalt.err (!%p208_p4)
}
   0xa   :  { %s215_s15 = smov 128   ;;  %s216_s16 = smov 8  }
   0xb   :  { %22 = dma.hbm_to_vmem [thread:$0]  %s256_s1, 2048, %s17_s13, [#allocation3], %s215_s15, %s215_s15, %s216_s16  }
   0xc   :  { %212 = dma.done.wait [#allocation3], 2048  }
   0xd   :  { %213 = vsyncadd [#allocation3], 4294965248  ;;  %v45_v0 = vld [vmem:[#allocation2 + $0x78] sm:$0xff]  ;;  %v44_v1 = vld [vmem:[#allocation2 + $0x70] sm:$0xff] }
   0xe   :  { %154 = vmatprep.subr.mxu0 %v45_v0  ;;  %v43_v2 = vld [vmem:[#allocation2 + $0x68] sm:$0xff]  ;;  %v42_v3 = vld [vmem:[#allocation2 + $0x60] sm:$0xff]  ;;  %v41_v5 = vld [vmem:[#allocation2 + $0x58] sm:$0xff] }
   0xf   :  { %155 = vmatpush3.msra.mxu0 %v45_v0  ;;  %v28_v4 = vld [vmem:[%s255_s0] sm:$0xff]  ;;  %v40_v6 = vld [vmem:[#allocation2 + $0x50] sm:$0xff]  ;;  %v39_v7 = vld [vmem:[#allocation2 + $0x48] sm:$0xff] }
  0x10   :  { %156 = vmatprep.subr.mxu0 %v44_v1  ;;  %186 = vmatprep.mubr.f32.mxu0 %v28_v4  ;;  %v38_v8 = vld [vmem:[#allocation2 + $0x40] sm:$0xff]  ;;  %v37_v9 = vld [vmem:[#allocation2 + $0x38] sm:$0xff]  ;;  %v36_v10 = vld [vmem:[#allocation2 + $0x30] sm:$0xff] }
  0x11   :  { %157 = vmatpush3.msra.mxu0 %v44_v1  ;;  %v35_v11 = vld [vmem:[#allocation2 + $0x28] sm:$0xff]  ;;  %v34_v12 = vld [vmem:[#allocation2 + $0x20] sm:$0xff]  ;;  %v33_v13 = vld [vmem:[#allocation2 + $0x18] sm:$0xff] }
  0x12   :  { %158 = vmatprep.subr.mxu0 %v43_v2  ;;  %v32_v14 = vld [vmem:[#allocation2 + $0x10] sm:$0xff]  ;;  %v31_v15 = vld [vmem:[#allocation2 + $0x8] sm:$0xff]  ;;  %v30_v16 = vld [vmem:[#allocation2] sm:$0xff] }
  0x13   :  { %159 = vmatpush3.msra.mxu0 %v43_v2  ;;  %v29_v17 = vld [vmem:[%s255_s0 + $0x8] sm:$0xff]  ;;  %v135_v18 = vld [vmem:[%s257_s2] ss:$0 sm:$0xff] }
  0x14   :  { %160 = vmatprep.subr.mxu0 %v42_v3 }
  0x15   :  { %161 = vmatpush3.msra.mxu0 %v42_v3 }
  0x16   :  { %162 = vmatprep.subr.mxu0 %v41_v5 }
  0x17   :  { %163 = vmatpush3.msra.mxu0 %v41_v5 }
  0x18   :  { %164 = vmatprep.subr.mxu0 %v40_v6 }
  0x19   :  { %165 = vmatpush3.msra.mxu0 %v40_v6 }
  0x1a   :  { %166 = vmatprep.subr.mxu0 %v39_v7 }
  0x1b   :  { %167 = vmatpush3.msra.mxu0 %v39_v7 }
  0x1c   :  { %168 = vmatprep.subr.mxu0 %v38_v8 }
  0x1d   :  { %169 = vmatpush3.msra.mxu0 %v38_v8 }
  0x1e   :  { %170 = vmatprep.subr.mxu0 %v37_v9 }
  0x1f   :  { %171 = vmatpush3.msra.mxu0 %v37_v9 }
  0x20   :  { %172 = vmatprep.subr.mxu0 %v36_v10 }
  0x21   :  { %173 = vmatpush3.msra.mxu0 %v36_v10 }
  0x22   :  { %174 = vmatprep.subr.mxu0 %v35_v11 }
  0x23   :  { %175 = vmatpush3.msra.mxu0 %v35_v11 }
  0x24   :  { %176 = vmatprep.subr.mxu0 %v34_v12 }
  0x25   :  { %177 = vmatpush3.msra.mxu0 %v34_v12 }
  0x26   :  { %178 = vmatprep.subr.mxu0 %v33_v13 }
  0x27   :  { %179 = vmatpush3.msra.mxu0 %v33_v13 }
  0x28   :  { %180 = vmatprep.subr.mxu0 %v32_v14 }
  0x29   :  { %181 = vmatpush3.msra.mxu0 %v32_v14 }
  0x2a   :  { %182 = vmatprep.subr.mxu0 %v31_v15 }
  0x2b   :  { %183 = vmatpush3.msra.mxu0 %v31_v15 }
  0x2c   :  { %184 = vmatprep.subr.mxu0 %v30_v16 }
  0x2d   :  { %185 = vmatpush3.msra.mxu0 %v30_v16 }
  0x2e   :  { %187 = vmatmul.mubr.f32.vlgmr.msra.gmra.mxu0 %v29_v17 }
  0xee   :  { %v188_v19 = vpop.f32.mrf.mxu0 }
  0xef   :  { %v125_v20 = vadd.f32 %v188_v19, %v135_v18 }
  0xf0   :  { %v119_v21 = vpop.f32.mrf.mxu0 }
  0xf1   :  { %129 = vst [vmem:[%s258_s3 + $0x8] sm:$0xff] %v125_v20  ;;  %v120_v22 = vadd.f32 %v135_v18, %v119_v21 }
  0xf3   :  { %128 = vst [vmem:[%s258_s3] sm:$0xff] %v120_v22 }
  0xf4   :  { %134 = vsyncpa [#allocation3], 1 }

</bundles_post_ra>
